<compile_context>
chip_gen: v6e
topology: v6e:2x2x1
jax: 0.10.0
libtpu: 0.0.40
codegen_flags: <defaults>
</compile_context>

<pallas_src>
import functools

import jax
import jax.numpy as jnp
from jax.experimental import pallas as pl
from jax.experimental.pallas import tpu as pltpu


def _round_up(a, m):
    return (a + m - 1) // m * m


def _mlp_kernel(x_ref, w2_ref, b2_ref, w3_ref, b3_ref, wo_ref, bo_ref,
                o_ref, acc_ref):
    # x_ref:  (TB, TK) input dtype (cast to bf16 in-kernel; no wrapper pass)
    # w2_ref: (TK, H) bf16 ; w3_ref: (H, H) bf16
    # b2/b3/wo: (1, H) f32 ; bo: (1, 1) f32
    # o_ref:  (1, TB) f32 lane-dense output row
    # acc_ref:(TB, H) f32 accumulator scratch (layer_2 reduction over K tiles)
    k = pl.program_id(1)

    @pl.when(k == 0)
    def _():
        acc_ref[...] = jnp.zeros_like(acc_ref)

    # layer_2 partial product for this K slab (bf16 MXU, f32 accumulation).
    xb = x_ref[...].astype(jnp.bfloat16)
    acc_ref[...] += jnp.dot(xb, w2_ref[...], preferred_element_type=jnp.float32)

    @pl.when(k == pl.num_programs(1) - 1)
    def _():
        # bias + ReLU.  Dropout (p=0.1) is identity in eval mode.
        # TODO(synk): training-mode dropout would use pltpu.prng_seed /
        # pltpu.prng_random_bits here.
        h = jnp.maximum(acc_ref[...] + b2_ref[...], 0.0)

        # layer_3 + ReLU (bf16 MXU inputs, f32 accumulation).
        h = jnp.dot(h.astype(jnp.bfloat16), w3_ref[...],
                    preferred_element_type=jnp.float32)
        h = jnp.maximum(h + b3_ref[...], 0.0)

        # layer_out (N=1): VPU multiply + XLU lane reduction keeps the MXU free.
        logit = jnp.sum(h * wo_ref[...], axis=-1, keepdims=True)     # (TB, 1)
        # Transpose first, then do bias + sigmoid on the dense (1, TB) row.
        row = jnp.transpose(logit) + bo_ref[...]                      # (1, TB)
        o_ref[...] = jax.nn.sigmoid(row)


def _vmem_capacity_bytes():
    try:
        return int(pltpu.get_tpu_info().vmem_capacity_bytes)
    except Exception:
        return 64 << 20  # v7x per-TensorCore VMEM (most restrictive)


def _choose_tiles(B, D, H, tile_b, tile_k):
    cap = _vmem_capacity_bytes()
    budget = int(cap * 0.75)  # headroom for compiler scratch / semaphores

    # ---- K tile (layer_2 reduction over D). tk must be a multiple of 128
    # ---- (lane dim of the x block) or equal to D.
    if tile_k is not None and 0 < tile_k < D and D % tile_k == 0 and tile_k % 128 == 0:
        tk = tile_k
    elif D % 128 == 0 and D * H * 2 > (16 << 20):
        # Large W2: stream it in K slabs so it need not be fully resident
        # (matters on v7x's 64 MiB VMEM).
        tk = 512 if D % 512 == 0 else 128
    else:
        tk = D
    num_k = D // tk

    # ---- batch tile from the VMEM budget ---------------------------------
    if num_k == 1:
        w2_bytes = D * H * 2            # resident, single-buffered
    else:
        w2_bytes = 2 * tk * H * 2       # streamed, double-buffered
    fixed = w2_bytes + H * H * 2 + (3 * H + 1) * 4 + (512 << 10)
    # x (native f32, double-buffered) + acc f32 + h f32/bf16 temporaries + out.
    per_row = 2 * tk * 4 + 12 * H + 8
    tb_cap = tile_b if tile_b is not None else 1024
    tb_max = max(16, (budget - fixed) // per_row)
    tb = min(tb_cap, tb_max, _round_up(B, 16))
    tb = max(16, (tb // 16) * 16)       # multiple of 16 (bf16 sublane packing)
    # >= 2 batch grid steps when batch allows, so the "parallel" axis can use
    # both v7x TensorCores (a single extra step is harmless on v5e/v6e).
    if B > 32 and -(-B // tb) == 1:
        tb = max(16, _round_up(-(-B // 2), 16))

    working = fixed + tb * per_row + 2 * tb * 4
    vmem_limit = int(min(cap, max(2 * working, 32 << 20)))
    return tb, tk, vmem_limit


@functools.partial(jax.jit,
                   static_argnames=("tb", "tk", "vmem_limit", "single_buffer"))
def _forward_impl(x, w2, b2, w3, b3, wo, bo, *, tb, tk, vmem_limit,
                  single_buffer):
    B, D = x.shape
    H = w2.shape[1]
    num_b = pl.cdiv(B, tb)
    num_k = pl.cdiv(D, tk)

    # Weights cast once (tiny vs. the x stream); biases / output row stay f32.
    w2b = w2.astype(jnp.bfloat16)
    w3b = w3.astype(jnp.bfloat16)
    b2r = b2.reshape(1, H).astype(jnp.float32)
    b3r = b3.reshape(1, H).astype(jnp.float32)
    wor = wo.reshape(1, H).astype(jnp.float32)
    bor = bo.reshape(1, 1).astype(jnp.float32)

    const_mode = pl.Buffered(1) if single_buffer else None
    w2_mode = const_mode if num_k == 1 else None  # stream W2 when K-tiled

    def _spec(shape, index_map, mode=None):
        if mode is None:
            return pl.BlockSpec(shape, index_map)
        return pl.BlockSpec(shape, index_map, pipeline_mode=mode)

    cost = pl.CostEstimate(
        flops=2 * B * (D * H + H * H + H),
        transcendentals=B,  # sigmoid exp
        bytes_accessed=(B * D * x.dtype.itemsize     # x (native dtype)
                        + D * H * 2                  # W2 (bf16)
                        + H * H * 2                  # W3 (bf16)
                        + (3 * H + 1) * 4            # b2, b3, wo_row, bo (f32)
                        + num_b * tb * 4),           # output (f32)
    )

    out = pl.pallas_call(
        _mlp_kernel,
        out_shape=jax.ShapeDtypeStruct((num_b, tb), jnp.float32),
        grid_spec=pltpu.PrefetchScalarGridSpec(
            num_scalar_prefetch=0,
            grid=(num_b, num_k),
            in_specs=[
                _spec((tb, tk), lambda i, k: (i, k)),             # x tile
                _spec((tk, H), lambda i, k: (k, 0), w2_mode),     # W2 slab
                _spec((1, H), lambda i, k: (0, 0), const_mode),   # b2
                _spec((H, H), lambda i, k: (0, 0), const_mode),   # W3
                _spec((1, H), lambda i, k: (0, 0), const_mode),   # b3
                _spec((1, H), lambda i, k: (0, 0), const_mode),   # Wo row
                _spec((1, 1), lambda i, k: (0, 0), const_mode),   # bo
            ],
            out_specs=pl.BlockSpec((1, tb), lambda i, k: (i, 0)),
            scratch_shapes=[pltpu.VMEM((tb, H), jnp.float32)],
        ),
        compiler_params=pltpu.CompilerParams(
            dimension_semantics=("parallel", "arbitrary"),
            vmem_limit_bytes=vmem_limit),
        cost_estimate=cost,
    )(x, w2b, b2r, w3b, b3r, wor, bor)

    # Padded rows of the ragged last block are garbage; drop them here. No
    # reduction is ever taken over them inside the kernel.
    return out.reshape(-1)[:B].reshape(B, 1)


def thin_multiclass_forward(x, w2, b2, w3, b3, wo, bo, *, tile_b=None,
                            tile_k=None):
    B, D = x.shape
    H = w2.shape[1]
    tb, tk, vmem_limit = _choose_tiles(B, D, H, tile_b, tile_k)
    try:
        return _forward_impl(x, w2, b2, w3, b3, wo, bo, tb=tb, tk=tk,
                             vmem_limit=vmem_limit, single_buffer=True)
    except Exception:
        # Fallback if this JAX build rejects pl.Buffered(1) single-buffering.
        return _forward_impl(x, w2, b2, w3, b3, wo, bo, tb=tb, tk=tk,
                             vmem_limit=vmem_limit, single_buffer=False)


def init_params(key, input_dim):
    """Deterministic synthetic parameters matching the PyTorch module shapes."""
    H = int(input_dim * 0.5)
    ks = jax.random.split(key, 6)
    # PyTorch nn.Linear stores weight as (out, in); we keep (in, out) for x @ W.
    w2 = jax.random.normal(ks[0], (input_dim, H), jnp.float32) * 0.1
    b2 = jax.random.normal(ks[1], (1, H), jnp.float32) * 0.1
    w3 = jax.random.normal(ks[2], (H, H), jnp.float32) * 0.1
    b3 = jax.random.normal(ks[3], (1, H), jnp.float32) * 0.1
    wo = jax.random.normal(ks[4], (H, 1), jnp.float32) * 0.1
    bo = jax.random.normal(ks[5], (1, 1), jnp.float32) * 0.1
    return w2, b2, w3, b3, wo, bo


def reference_forward_f32(x, w2, b2, w3, b3, wo, bo):
    h = jnp.maximum(x @ w2 + b2, 0.0)
    h = jnp.maximum(h @ w3 + b3, 0.0)
    return jax.nn.sigmoid(h @ wo + bo)


def reference_forward_bf16(x, w2, b2, w3, b3, wo, bo):
    """Mirror of the kernel's bf16-input / f32-accumulate arithmetic."""
    h = jnp.dot(x.astype(jnp.bfloat16), w2.astype(jnp.bfloat16),
                preferred_element_type=jnp.float32) + b2
    h = jnp.maximum(h, 0.0)
    h = jnp.dot(h.astype(jnp.bfloat16), w3.astype(jnp.bfloat16),
                preferred_element_type=jnp.float32) + b3
    h = jnp.maximum(h, 0.0)
    return jax.nn.sigmoid(jnp.dot(h, wo, preferred_element_type=jnp.float32) + bo)


if __name__ == "__main__":
    key = jax.random.PRNGKey(0)
    kx, kp, kx2, kp2 = jax.random.split(key, 4)

    # Case 1: tiny shapes (batch=8, input_dim=32); single K step, ragged block.
    B, D = 8, 32
    x = jax.random.normal(kx, (B, D), jnp.float32)
    params = init_params(kp, D)
    out = jax.block_until_ready(thin_multiclass_forward(x, *params))
    assert out.shape == (B, 1)
    ref_b = reference_forward_bf16(x, *params)
    ref_f = reference_forward_f32(x, *params)
    assert jnp.allclose(out, ref_b, atol=5e-3, rtol=0), \
        f"case1 max |diff| vs bf16 ref = {jnp.max(jnp.abs(out - ref_b))}"
    assert jnp.allclose(out, ref_f, atol=3e-2, rtol=0), \
        f"case1 max |diff| vs f32 ref = {jnp.max(jnp.abs(out - ref_f))}"

    # Case 2: exercise the K-tiled layer_2 path (reduction grid axis).
    B2, D2 = 24, 256
    x2 = jax.random.normal(kx2, (B2, D2), jnp.float32)
    params2 = init_params(kp2, D2)
    out2 = jax.block_until_ready(
        thin_multiclass_forward(x2, *params2, tile_k=128))
    assert out2.shape == (B2, 1)
    ref2_b = reference_forward_bf16(x2, *params2)
    ref2_f = reference_forward_f32(x2, *params2)
    assert jnp.allclose(out2, ref2_b, atol=5e-3, rtol=0), \
        f"case2 max |diff| vs bf16 ref = {jnp.max(jnp.abs(out2 - ref2_b))}"
    assert jnp.allclose(out2, ref2_f, atol=5e-2, rtol=0), \
        f"case2 max |diff| vs f32 ref = {jnp.max(jnp.abs(out2 - ref2_f))}"

    print("KERNEL_OK")
</pallas_src>

<mosaic_0001>
module attributes {stable_mosaic.version = 11 : i64} {
  func.func @_mlp_kernel(%arg0: i32, %arg1: i32, %arg2: memref<16x32xf32, #tpu.memory_space<vmem>>, %arg3: memref<32x16xbf16, #tpu.memory_space<vmem>>, %arg4: memref<1x16xf32, #tpu.memory_space<vmem>>, %arg5: memref<16x16xbf16, #tpu.memory_space<vmem>>, %arg6: memref<1x16xf32, #tpu.memory_space<vmem>>, %arg7: memref<1x16xf32, #tpu.memory_space<vmem>>, %arg8: memref<1x1xf32, #tpu.memory_space<vmem>>, %arg9: memref<1x16xf32, #tpu.memory_space<vmem>>, %arg10: memref<16x16xf32, #tpu.memory_space<vmem>>) attributes {dimension_semantics = [#tpu.dimension_semantics<parallel>, #tpu.dimension_semantics<arbitrary>], iteration_bounds = array<i64: 1, 1>, scalar_prefetch = 0 : i64, scratch_operands = 1 : i64, tpu.core_type = #tpu.core_type<tc>, window_params = [{transform_indices = @transform_0, window_bounds = array<i64: 16, 32>}, {pipeline_mode = #tpu.pipeline_mode<synchronous>, transform_indices = @transform_1, window_bounds = array<i64: 32, 16>}, {pipeline_mode = #tpu.pipeline_mode<synchronous>, transform_indices = @transform_2, window_bounds = array<i64: 1, 16>}, {pipeline_mode = #tpu.pipeline_mode<synchronous>, transform_indices = @transform_3, window_bounds = array<i64: 16, 16>}, {pipeline_mode = #tpu.pipeline_mode<synchronous>, transform_indices = @transform_4, window_bounds = array<i64: 1, 16>}, {pipeline_mode = #tpu.pipeline_mode<synchronous>, transform_indices = @transform_5, window_bounds = array<i64: 1, 16>}, {pipeline_mode = #tpu.pipeline_mode<synchronous>, transform_indices = @transform_6, window_bounds = array<i64: 1, 1>}, {transform_indices = @transform_7, window_bounds = array<i64: 1, 16>}]} {
    %c0_i32 = arith.constant 0 : i32
    %0 = arith.cmpi eq, %arg1, %c0_i32 : i32
    %1 = arith.extui %0 : i1 to i32
    %c0_i32_0 = arith.constant 0 : i32
    %2 = arith.cmpi ne, %1, %c0_i32_0 : i32
    scf.if %2 {
      %cst_10 = arith.constant 0.000000e+00 : f32
      %13 = vector.broadcast %cst_10 : f32 to vector<16x16xf32>
      %c0_11 = arith.constant 0 : index
      %c0_12 = arith.constant 0 : index
      %14 = vector.load %arg10[%c0_11, %c0_12] : memref<16x16xf32, #tpu.memory_space<vmem>>, vector<16x16xf32>
      tpu.vector_store %arg10[%c0_11, %c0_12], %13 {strides = array<i32>} : memref<16x16xf32, #tpu.memory_space<vmem>>, vector<16x16xf32>,
    } else {
    }
    %c0 = arith.constant 0 : index
    %c0_1 = arith.constant 0 : index
    %3 = vector.load %arg2[%c0, %c0_1] : memref<16x32xf32, #tpu.memory_space<vmem>>, vector<16x32xf32>
    %4 = arith.truncf %3 : vector<16x32xf32> to vector<16x32xbf16>
    %c0_2 = arith.constant 0 : index
    %c0_3 = arith.constant 0 : index
    %5 = vector.load %arg10[%c0_2, %c0_3] : memref<16x16xf32, #tpu.memory_space<vmem>>, vector<16x16xf32>
    %c0_4 = arith.constant 0 : index
    %c0_5 = arith.constant 0 : index
    %6 = vector.load %arg3[%c0_4, %c0_5] : memref<32x16xbf16, #tpu.memory_space<vmem>>, vector<32x16xbf16>
    %cst = arith.constant dense<0.000000e+00> : vector<16x16xf32>
    %7 = tpu.matmul %4, %6, %cst {dimension_numbers = #tpu.dot_dimension_numbers<[1], [0], [0], [1], [0, 0, 1, 1], [], []>} : vector<16x32xbf16>, vector<32x16xbf16>, vector<16x16xf32> -> vector<16x16xf32>
    %8 = arith.addf %5, %7 : vector<16x16xf32>
    %c0_6 = arith.constant 0 : index
    %c0_7 = arith.constant 0 : index
    %9 = vector.load %arg10[%c0_6, %c0_7] : memref<16x16xf32, #tpu.memory_space<vmem>>, vector<16x16xf32>
    tpu.vector_store %arg10[%c0_6, %c0_7], %8 {strides = array<i32>} : memref<16x16xf32, #tpu.memory_space<vmem>>, vector<16x16xf32>,
    %c0_i32_8 = arith.constant 0 : i32
    %10 = arith.cmpi eq, %arg1, %c0_i32_8 : i32
    %11 = arith.extui %10 : i1 to i32
    %c0_i32_9 = arith.constant 0 : i32
    %12 = arith.cmpi ne, %11, %c0_i32_9 : i32
    scf.if %12 {
      %c0_10 = arith.constant 0 : index
      %c0_11 = arith.constant 0 : index
      %13 = vector.load %arg10[%c0_10, %c0_11] : memref<16x16xf32, #tpu.memory_space<vmem>>, vector<16x16xf32>
      %c0_12 = arith.constant 0 : index
      %c0_13 = arith.constant 0 : index
      %14 = vector.load %arg4[%c0_12, %c0_13] : memref<1x16xf32, #tpu.memory_space<vmem>>, vector<1x16xf32>
      %15 = vector.broadcast %14 : vector<1x16xf32> to vector<16x16xf32>
      %16 = arith.addf %13, %15 : vector<16x16xf32>
      %cst_14 = arith.constant 0.000000e+00 : f32
      %17 = vector.broadcast %cst_14 : f32 to vector<16x16xf32>
      %18 = arith.maximumf %16, %17 : vector<16x16xf32>
      %19 = arith.truncf %18 : vector<16x16xf32> to vector<16x16xbf16>
      %c0_15 = arith.constant 0 : index
      %c0_16 = arith.constant 0 : index
      %20 = vector.load %arg5[%c0_15, %c0_16] : memref<16x16xbf16, #tpu.memory_space<vmem>>, vector<16x16xbf16>
      %cst_17 = arith.constant dense<0.000000e+00> : vector<16x16xf32>
      %21 = tpu.matmul %19, %20, %cst_17 {dimension_numbers = #tpu.dot_dimension_numbers<[1], [0], [0], [1], [0, 0, 1, 1], [], []>} : vector<16x16xbf16>, vector<16x16xbf16>, vector<16x16xf32> -> vector<16x16xf32>
      %c0_18 = arith.constant 0 : index
      %c0_19 = arith.constant 0 : index
      %22 = vector.load %arg6[%c0_18, %c0_19] : memref<1x16xf32, #tpu.memory_space<vmem>>, vector<1x16xf32>
      %23 = vector.broadcast %22 : vector<1x16xf32> to vector<16x16xf32>
      %24 = arith.addf %21, %23 : vector<16x16xf32>
      %cst_20 = arith.constant 0.000000e+00 : f32
      %25 = vector.broadcast %cst_20 : f32 to vector<16x16xf32>
      %26 = arith.maximumf %24, %25 : vector<16x16xf32>
      %c0_21 = arith.constant 0 : index
      %c0_22 = arith.constant 0 : index
      %27 = vector.load %arg7[%c0_21, %c0_22] : memref<1x16xf32, #tpu.memory_space<vmem>>, vector<1x16xf32>
      %28 = vector.broadcast %27 : vector<1x16xf32> to vector<16x16xf32>
      %29 = arith.mulf %26, %28 : vector<16x16xf32>
      %cst_23 = arith.constant dense<0.000000e+00> : vector<16xf32>
      %30 = vector.multi_reduction <add>, %29, %cst_23 [1] : vector<16x16xf32> to vector<16xf32>
      %31 = vector.shape_cast %30 : vector<16xf32> to vector<16x1xf32>
      %32 = tpu.transpose %31, [1, 0] : vector<16x1xf32> -> vector<1x16xf32>
      %c0_24 = arith.constant 0 : index
      %c0_25 = arith.constant 0 : index
      %33 = vector.load %arg8[%c0_24, %c0_25] : memref<1x1xf32, #tpu.memory_space<vmem>>, vector<1x1xf32>
      %34 = vector.broadcast %33 : vector<1x1xf32> to vector<1x16xf32>
      %35 = arith.addf %32, %34 : vector<1x16xf32>
      %36 = arith.negf %35 : vector<1x16xf32>
      %37 = math.exp %36 : vector<1x16xf32>
      %cst_26 = arith.constant 1.000000e+00 : f32
      %38 = vector.broadcast %cst_26 : f32 to vector<1x16xf32>
      %39 = arith.addf %38, %37 : vector<1x16xf32>
      %40 = arith.divf %38, %39 : vector<1x16xf32>
      %c0_27 = arith.constant 0 : index
      %c0_28 = arith.constant 0 : index
      %41 = vector.load %arg9[%c0_27, %c0_28] : memref<1x16xf32, #tpu.memory_space<vmem>>, vector<1x16xf32>
      tpu.vector_store %arg9[%c0_27, %c0_28], %40 {strides = array<i32>} : memref<1x16xf32, #tpu.memory_space<vmem>>, vector<1x16xf32>,
    } else {
    }
    return
  }
  func.func @transform_0(%arg0: i32, %arg1: i32) -> (i32, i32) {
    %c0_i32 = arith.constant 0 : i32
    return %arg0, %arg1 : i32, i32
  }
  func.func @transform_1(%arg0: i32, %arg1: i32) -> (i32, i32) {
    %c0_i32 = arith.constant 0 : i32
    %c0_i32_0 = arith.constant 0 : i32
    return %arg1, %c0_i32 : i32, i32
  }
  func.func @transform_2(%arg0: i32, %arg1: i32) -> (i32, i32) {
    %c0_i32 = arith.constant 0 : i32
    %c0_i32_0 = arith.constant 0 : i32
    %c0_i32_1 = arith.constant 0 : i32
    return %c0_i32, %c0_i32_0 : i32, i32
  }
  func.func @transform_3(%arg0: i32, %arg1: i32) -> (i32, i32) {
    %c0_i32 = arith.constant 0 : i32
    %c0_i32_0 = arith.constant 0 : i32
    %c0_i32_1 = arith.constant 0 : i32
    return %c0_i32, %c0_i32_0 : i32, i32
  }
  func.func @transform_4(%arg0: i32, %arg1: i32) -> (i32, i32) {
    %c0_i32 = arith.constant 0 : i32
    %c0_i32_0 = arith.constant 0 : i32
    %c0_i32_1 = arith.constant 0 : i32
    return %c0_i32, %c0_i32_0 : i32, i32
  }
  func.func @transform_5(%arg0: i32, %arg1: i32) -> (i32, i32) {
    %c0_i32 = arith.constant 0 : i32
    %c0_i32_0 = arith.constant 0 : i32
    %c0_i32_1 = arith.constant 0 : i32
    return %c0_i32, %c0_i32_0 : i32, i32
  }
  func.func @transform_6(%arg0: i32, %arg1: i32) -> (i32, i32) {
    %c0_i32 = arith.constant 0 : i32
    %c0_i32_0 = arith.constant 0 : i32
    %c0_i32_1 = arith.constant 0 : i32
    return %c0_i32, %c0_i32_0 : i32, i32
  }
  func.func @transform_7(%arg0: i32, %arg1: i32) -> (i32, i32) {
    %c0_i32 = arith.constant 0 : i32
    %c0_i32_0 = arith.constant 0 : i32
    return %arg0, %c0_i32 : i32, i32
  }
}

module attributes {stable_mosaic.version = 11 : i64} {
  func.func @_mlp_kernel(%arg0: i32, %arg1: i32, %arg2: memref<16x32xf32, #tpu.memory_space<vmem>>, %arg3: memref<32x16xbf16, #tpu.memory_space<vmem>>, %arg4: memref<1x16xf32, #tpu.memory_space<vmem>>, %arg5: memref<16x16xbf16, #tpu.memory_space<vmem>>, %arg6: memref<1x16xf32, #tpu.memory_space<vmem>>, %arg7: memref<1x16xf32, #tpu.memory_space<vmem>>, %arg8: memref<1x1xf32, #tpu.memory_space<vmem>>, %arg9: memref<1x16xf32, #tpu.memory_space<vmem>>, %arg10: memref<16x16xf32, #tpu.memory_space<vmem>>) attributes {dimension_semantics = [#tpu.dimension_semantics<parallel>, #tpu.dimension_semantics<arbitrary>], iteration_bounds = array<i64: 1, 1>, scalar_prefetch = 0 : i64, scratch_operands = 1 : i64, tpu.core_type = #tpu.core_type<tc>, window_params = [{transform_indices = @transform_0, window_bounds = array<i64: 16, 32>}, {transform_indices = @transform_1, window_bounds = array<i64: 32, 16>}, {pipeline_mode = #tpu.pipeline_mode<synchronous>, transform_indices = @transform_2, window_bounds = array<i64: 1, 16>}, {pipeline_mode = #tpu.pipeline_mode<synchronous>, transform_indices = @transform_3, window_bounds = array<i64: 16, 16>}, {pipeline_mode = #tpu.pipeline_mode<synchronous>, transform_indices = @transform_4, window_bounds = array<i64: 1, 16>}, {pipeline_mode = #tpu.pipeline_mode<synchronous>, transform_indices = @transform_5, window_bounds = array<i64: 1, 16>}, {pipeline_mode = #tpu.pipeline_mode<synchronous>, transform_indices = @transform_6, window_bounds = array<i64: 1, 1>}, {transform_indices = @transform_7, window_bounds = array<i64: 1, 16>}]} {
    %c0_i32 = arith.constant 0 : i32
    %0 = arith.cmpi eq, %arg1, %c0_i32 : i32
    %1 = arith.extui %0 : i1 to i32
    %c0_i32_0 = arith.constant 0 : i32
    %2 = arith.cmpi ne, %1, %c0_i32_0 : i32
    scf.if %2 {
      %cst_10 = arith.constant 0.000000e+00 : f32
      %13 = vector.broadcast %cst_10 : f32 to vector<16x16xf32>
      %c0_11 = arith.constant 0 : index
      %c0_12 = arith.constant 0 : index
      %14 = vector.load %arg10[%c0_11, %c0_12] : memref<16x16xf32, #tpu.memory_space<vmem>>, vector<16x16xf32>
      tpu.vector_store %arg10[%c0_11, %c0_12], %13 {strides = array<i32>} : memref<16x16xf32, #tpu.memory_space<vmem>>, vector<16x16xf32>,
    } else {
    }
    %c0 = arith.constant 0 : index
    %c0_1 = arith.constant 0 : index
    %3 = vector.load %arg2[%c0, %c0_1] : memref<16x32xf32, #tpu.memory_space<vmem>>, vector<16x32xf32>
    %4 = arith.truncf %3 : vector<16x32xf32> to vector<16x32xbf16>
    %c0_2 = arith.constant 0 : index
    %c0_3 = arith.constant 0 : index
    %5 = vector.load %arg10[%c0_2, %c0_3] : memref<16x16xf32, #tpu.memory_space<vmem>>, vector<16x16xf32>
    %c0_4 = arith.constant 0 : index
    %c0_5 = arith.constant 0 : index
    %6 = vector.load %arg3[%c0_4, %c0_5] : memref<32x16xbf16, #tpu.memory_space<vmem>>, vector<32x16xbf16>
    %cst = arith.constant dense<0.000000e+00> : vector<16x16xf32>
    %7 = tpu.matmul %4, %6, %cst {dimension_numbers = #tpu.dot_dimension_numbers<[1], [0], [0], [1], [0, 0, 1, 1], [], []>} : vector<16x32xbf16>, vector<32x16xbf16>, vector<16x16xf32> -> vector<16x16xf32>
    %8 = arith.addf %5, %7 : vector<16x16xf32>
    %c0_6 = arith.constant 0 : index
    %c0_7 = arith.constant 0 : index
    %9 = vector.load %arg10[%c0_6, %c0_7] : memref<16x16xf32, #tpu.memory_space<vmem>>, vector<16x16xf32>
    tpu.vector_store %arg10[%c0_6, %c0_7], %8 {strides = array<i32>} : memref<16x16xf32, #tpu.memory_space<vmem>>, vector<16x16xf32>,
    %c0_i32_8 = arith.constant 0 : i32
    %10 = arith.cmpi eq, %arg1, %c0_i32_8 : i32
    %11 = arith.extui %10 : i1 to i32
    %c0_i32_9 = arith.constant 0 : i32
    %12 = arith.cmpi ne, %11, %c0_i32_9 : i32
    scf.if %12 {
      %c0_10 = arith.constant 0 : index
      %c0_11 = arith.constant 0 : index
      %13 = vector.load %arg10[%c0_10, %c0_11] : memref<16x16xf32, #tpu.memory_space<vmem>>, vector<16x16xf32>
      %c0_12 = arith.constant 0 : index
      %c0_13 = arith.constant 0 : index
      %14 = vector.load %arg4[%c0_12, %c0_13] : memref<1x16xf32, #tpu.memory_space<vmem>>, vector<1x16xf32>
      %15 = vector.broadcast %14 : vector<1x16xf32> to vector<16x16xf32>
      %16 = arith.addf %13, %15 : vector<16x16xf32>
      %cst_14 = arith.constant 0.000000e+00 : f32
      %17 = vector.broadcast %cst_14 : f32 to vector<16x16xf32>
      %18 = arith.maximumf %16, %17 : vector<16x16xf32>
      %19 = arith.truncf %18 : vector<16x16xf32> to vector<16x16xbf16>
      %c0_15 = arith.constant 0 : index
      %c0_16 = arith.constant 0 : index
      %20 = vector.load %arg5[%c0_15, %c0_16] : memref<16x16xbf16, #tpu.memory_space<vmem>>, vector<16x16xbf16>
      %cst_17 = arith.constant dense<0.000000e+00> : vector<16x16xf32>
      %21 = tpu.matmul %19, %20, %cst_17 {dimension_numbers = #tpu.dot_dimension_numbers<[1], [0], [0], [1], [0, 0, 1, 1], [], []>} : vector<16x16xbf16>, vector<16x16xbf16>, vector<16x16xf32> -> vector<16x16xf32>
      %c0_18 = arith.constant 0 : index
      %c0_19 = arith.constant 0 : index
      %22 = vector.load %arg6[%c0_18, %c0_19] : memref<1x16xf32, #tpu.memory_space<vmem>>, vector<1x16xf32>
      %23 = vector.broadcast %22 : vector<1x16xf32> to vector<16x16xf32>
      %24 = arith.addf %21, %23 : vector<16x16xf32>
      %cst_20 = arith.constant 0.000000e+00 : f32
      %25 = vector.broadcast %cst_20 : f32 to vector<16x16xf32>
      %26 = arith.maximumf %24, %25 : vector<16x16xf32>
      %c0_21 = arith.constant 0 : index
      %c0_22 = arith.constant 0 : index
      %27 = vector.load %arg7[%c0_21, %c0_22] : memref<1x16xf32, #tpu.memory_space<vmem>>, vector<1x16xf32>
      %28 = vector.broadcast %27 : vector<1x16xf32> to vector<16x16xf32>
      %29 = arith.mulf %26, %28 : vector<16x16xf32>
      %cst_23 = arith.constant dense<0.000000e+00> : vector<16xf32>
      %30 = vector.multi_reduction <add>, %29, %cst_23 [1] : vector<16x16xf32> to vector<16xf32>
      %31 = vector.shape_cast %30 : vector<16xf32> to vector<16x1xf32>
      %32 = tpu.transpose %31, [1, 0] : vector<16x1xf32> -> vector<1x16xf32>
      %c0_24 = arith.constant 0 : index
      %c0_25 = arith.constant 0 : index
      %33 = vector.load %arg8[%c0_24, %c0_25] : memref<1x1xf32, #tpu.memory_space<vmem>>, vector<1x1xf32>
      %34 = vector.broadcast %33 : vector<1x1xf32> to vector<1x16xf32>
      %35 = arith.addf %32, %34 : vector<1x16xf32>
      %36 = arith.negf %35 : vector<1x16xf32>
      %37 = math.exp %36 : vector<1x16xf32>
      %cst_26 = arith.constant 1.000000e+00 : f32
      %38 = vector.broadcast %cst_26 : f32 to vector<1x16xf32>
      %39 = arith.addf %38, %37 : vector<1x16xf32>
      %40 = arith.divf %38, %39 : vector<1x16xf32>
      %c0_27 = arith.constant 0 : index
      %c0_28 = arith.constant 0 : index
      %41 = vector.load %arg9[%c0_27, %c0_28] : memref<1x16xf32, #tpu.memory_space<vmem>>, vector<1x16xf32>
      tpu.vector_store %arg9[%c0_27, %c0_28], %40 {strides = array<i32>} : memref<1x16xf32, #tpu.memory_space<vmem>>, vector<1x16xf32>,
    } else {
    }
    return
  }
  func.func @transform_0(%arg0: i32, %arg1: i32) -> (i32, i32) {
    %c0_i32 = arith.constant 0 : i32
    return %arg0, %arg1 : i32, i32
  }
  func.func @transform_1(%arg0: i32, %arg1: i32) -> (i32, i32) {
    %c0_i32 = arith.constant 0 : i32
    %c0_i32_0 = arith.constant 0 : i32
    return %arg1, %c0_i32 : i32, i32
  }
  func.func @transform_2(%arg0: i32, %arg1: i32) -> (i32, i32) {
    %c0_i32 = arith.constant 0 : i32
    %c0_i32_0 = arith.constant 0 : i32
    %c0_i32_1 = arith.constant 0 : i32
    return %c0_i32, %c0_i32_0 : i32, i32
  }
  func.func @transform_3(%arg0: i32, %arg1: i32) -> (i32, i32) {
    %c0_i32 = arith.constant 0 : i32
    %c0_i32_0 = arith.constant 0 : i32
    %c0_i32_1 = arith.constant 0 : i32
    return %c0_i32, %c0_i32_0 : i32, i32
  }
  func.func @transform_4(%arg0: i32, %arg1: i32) -> (i32, i32) {
    %c0_i32 = arith.constant 0 : i32
    %c0_i32_0 = arith.constant 0 : i32
    %c0_i32_1 = arith.constant 0 : i32
    return %c0_i32, %c0_i32_0 : i32, i32
  }
  func.func @transform_5(%arg0: i32, %arg1: i32) -> (i32, i32) {
    %c0_i32 = arith.constant 0 : i32
    %c0_i32_0 = arith.constant 0 : i32
    %c0_i32_1 = arith.constant 0 : i32
    return %c0_i32, %c0_i32_0 : i32, i32
  }
  func.func @transform_6(%arg0: i32, %arg1: i32) -> (i32, i32) {
    %c0_i32 = arith.constant 0 : i32
    %c0_i32_0 = arith.constant 0 : i32
    %c0_i32_1 = arith.constant 0 : i32
    return %c0_i32, %c0_i32_0 : i32, i32
  }
  func.func @transform_7(%arg0: i32, %arg1: i32) -> (i32, i32) {
    %c0_i32 = arith.constant 0 : i32
    %c0_i32_0 = arith.constant 0 : i32
    return %arg0, %c0_i32 : i32, i32
  }
}

</mosaic_0001>

<bundles_post_ra>
// kernel: _forward_impl.1
= control target key start
LH: loop header
LB: loop body
LE: loop exit
PB: predicated region body
PF: predicated region fallthrough
CT: control target
= control target key end

     0   :  { %vm33_vm0 = vcmask 130048   ;;  %v295_v0 = vmov 0.0   ;;  %vm296_vm1 = vmmov 0   ;;  %vm57_vm2 = vcmask 261120   ;;  %s375_s1 = inlined_call_operand.vmem [shape: bf16[32,16], index: 1, kind: input, shape index: {}]   ;;  %s376_s0 = inlined_call_operand.vmem [shape: f32[8,32], index: 0, kind: input, shape index: {}]   ;;  %s377_s3 = inlined_call_operand.vmem [shape: bf16[16,16], index: 3, kind: input, shape index: {}]   ;;  %s378_s2 = inlined_call_operand.vmem [shape: f32[1,16], index: 2, kind: input, shape index: {}]   ;;  %s379_s6 = inlined_call_operand.<no memory space> [shape: f32[1,1], index: 6, kind: input, shape index: {}]   ;;  %s380_s4 = inlined_call_operand.vmem [shape: f32[1,16], index: 4, kind: input, shape index: {}]   ;;  %s381_s5 = inlined_call_operand.vmem [shape: f32[1,16], index: 5, kind: input, shape index: {}]   ;;  %s382_s7 = inlined_call_operand.vmem [shape: f32[1,16], index: 7, kind: output, shape index: {}]  }
   0x1   :  { %269 = vmatprep.subr.bf16.mxu0 %v295_v0  ;;  %v288_v1 = vld [vmem:[%s375_s1 + $0x8] sm:$0xff]   ;;  %273 = vmatprep.mubr.msk.bf16.mxu0 %vm296_vm1, %v295_v0  ;;  %34 = vst.msk [vmem:[#allocation2] sm:$0xff] %vm33_vm0, %v295_v0  ;;  %35 = vst.msk [vmem:[#allocation2 + $0x8] sm:$0xff] %vm33_vm0, %v295_v0  ;;  %v289_v2 = vld [vmem:[%s375_s1] sm:$0xff]   ;;  %v297_v23 = vmov 0   ;;  %v12_v24 = vstv %s379_s6  ;;  %v238_v42 = vlaneseq  ;;  %vm249_vm3 = vcmask 122880  }
   0x2   :  { %277 = vmatprep.subr.bf16.mxu1 %v295_v0  ;;  %279 = vmatprep.mubr.msk.bf16.mxu1 %vm296_vm1, %v295_v0  ;;  %v36_v3 = vld [vmem:[%s376_s0] sm:$0xff]  ;;  %v37_v4 = vld [vmem:[%s376_s0 + $0x8] sm:$0xff]  ;;  %13 = vst [vmem:[#allocation3] sm:$0x1] %v12_v24 }
   0x3   :  { %270 = vmatpush3.bf16.msra.mxu0 %v288_v1  ;;  %v38_v5 = vpack.c.bf16 %v37_v4, %v36_v3  ;;  %v290_v6 = vld [vmem:[%s377_s3] sm:$0xff]   ;;  %286 = vset.pattern.permute.xlu1 %v297_v23  ;;  %v239_v43 = vshrl.u32 %v238_v42, 7 }
   0x4   :  { %271 = vmatprep.subr.bf16.mxu0 %v295_v0  ;;  %278 = vmatpush3.bf16.msra.mxu1 %v290_v6  ;;  %v258_v16 = vld [vmem:[%s378_s2] ss:$0 sm:$0xff] }
   0x5   :  { %287 = vset.pattern.permute.xlu0 %v297_v23  ;;  %v259_v26 = vld [vmem:[%s380_s4] ss:$0 sm:$0xff]  ;;  %v240_v44 = vsub.s32 0, %v239_v43 }
   0x6   :  { %v262_v30 = vld [vmem:[%s381_s5] ss:$0 sm:$0xff] }
   0x7   :  { %272 = vmatpush3.bf16.msra.mxu0 %v289_v2 }
   0x8   :  { %v39_v7 = vld [vmem:[#allocation2] sm:$0xff]  ;;  %v40_v11 = vld [vmem:[#allocation2 + $0x8] sm:$0xff] }
   0x9   :  { %v232_v25 = vld [vmem:[#allocation3] sm:$0x1] }
   0xa   :  { %274 = vmatmul.mubr.msk.bf16.vlgmr.msra.gmra.mxu0 %vm57_vm2, %v38_v5  ;;  %235 = vperm.xlu1 %286, %v232_v25  }
  0x85   :  { %v236_v45 = vpop.permute.xlu1 %235 }
  0x86   :  { %v241_v46 = vrot.slane %v236_v45, %v240_v44 }
  0xca   :  { %v95_v8 = vpop.f32.mrf.mxu0 }
  0xcb   :  { %v102_v9 = vadd.f32 %v95_v8, %v39_v7 }
  0xcc   :  { %v275_v10 = vpop.f32.mrf.mxu0 }
  0xcd   :  { %105 = vst.msk [vmem:[#allocation2] sm:$0xff] %vm33_vm0, %v102_v9 }
  0xce   :  { %v98_v12 = vpop.f32.mrf.mxu0 }
  0xcf   :  { %v103_v13 = vadd.f32 %v98_v12, %v40_v11 }
  0xd0   :  { %v276_v14 = vpop.f32.mrf.mxu0 }
  0xd1   :  { %106 = vst.msk [vmem:[#allocation2 + $0x8] sm:$0xff] %vm33_vm0, %v103_v13 }
  0xd4   :  { %v110_v15 = vld [vmem:[#allocation2] sm:$0xff] }
  0xd5   :  { %v119_v17 = vadd.f32 %v258_v16, %v110_v15 }
  0xd7   :  { %v121_v20 = vmax.f32 %v119_v17, 0.0 }
  0xd8   :  { %v111_v18 = vld [vmem:[#allocation2 + $0x8] sm:$0xff] }
  0xd9   :  { %v120_v19 = vadd.f32 %v258_v16, %v111_v18 }
  0xdb   :  { %v122_v21 = vmax.f32 %v120_v19, 0.0 }
  0xdd   :  { %v123_v22 = vpack.c.bf16 %v122_v21, %v121_v20 }
  0xdf   :  { %280 = vmatmul.mubr.msk.bf16.vlgmr.msra.gmra.mxu1 %vm33_vm0, %v123_v22 }
 0x19f   :  { %v176_v27 = vpop.f32.mrf.mxu1 }
 0x1a0   :  { %v177_v28 = vadd.f32 %v259_v26, %v176_v27 }
 0x1a1   :  { %v281_v29 = vpop.f32.mrf.mxu1 }
 0x1a2   :  { %v183_v31 = vmax.f32 %v177_v28, 0.0 }
 0x1a3   :  { %v179_v32 = vpop.f32.mrf.mxu1 }
 0x1a4   :  { %v180_v33 = vadd.f32 %v259_v26, %v179_v32  ;;  %v192_v34 = vmul.f32 %v262_v30, %v183_v31 }
 0x1a5   :  { %v282_v35 = vpop.f32.mrf.mxu1 }
 0x1a6   :  { %v184_v36 = vmax.f32 %v180_v33, 0.0  ;;  %v194_v37 = vsel %vm33_vm0, %v192_v34, 0.0 }
 0x1a7   :  { %195 = vadd.xlane.f32.xlu0 %v194_v37 }
 0x1a8   :  { %v193_v38 = vmul.f32 %v262_v30, %v184_v36 }
 0x1aa   :  { %v197_v39 = vsel %vm33_vm0, %v193_v38, 0.0 }
 0x1ab   :  { %198 = vadd.xlane.f32.xlu0 %v197_v39 }
 0x230   :  { %v196_v40 = vpop.xlane.xlu0 %195 }
 0x231   :  { %200 = vxpose.xlu1.b32.start [1/2] (short) (narrow) %v196_v40, 8 }
 0x234   :  { %v199_v41 = vpop.xlane.xlu0 %198 }
 0x235   :  { %201 = vxpose.xlu1.b32.end [2/2] (short) (narrow) %v199_v41, 8 }
 0x2ad   :  { %v216_v47 = vpop.trf.xlu1 }
 0x2ae   :  { %v242_v48 = vadd.f32 %v241_v46, %v216_v47 }
 0x2b0   :  { %v263_v49 = vmul.f32 -1.442695, %v242_v48 }
 0x2b2   :  { %291 = vpow2.f32 %v263_v49 }
 0x2bf   :  { %v292_v50 = vpop.eup %291 }
 0x2c0   :  { %v246_v51 = vadd.f32 1.0, %v292_v50 }
 0x2c2   :  { %293 = vrcp.f32 %v246_v51 }
 0x2cf   :  { %v294_v52 = vpop.eup %293 }
 0x2d0   :  { %250 = vst.msk [vmem:[%s382_s7] sm:$0x1] %vm249_vm3, %v294_v52 }

// kernel: _forward_impl.1
= control target key start
LH: loop header
LB: loop body
LE: loop exit
PB: predicated region body
PF: predicated region fallthrough
CT: control target
= control target key end

     0   :  { %vm33_vm0 = vcmask 130048   ;;  %v295_v0 = vmov 0.0   ;;  %vm296_vm1 = vmmov 0   ;;  %vm57_vm2 = vcmask 261120   ;;  %s375_s1 = inlined_call_operand.vmem [shape: bf16[32,16], index: 1, kind: input, shape index: {}]   ;;  %s376_s0 = inlined_call_operand.vmem [shape: f32[8,32], index: 0, kind: input, shape index: {}]   ;;  %s377_s3 = inlined_call_operand.vmem [shape: bf16[16,16], index: 3, kind: input, shape index: {}]   ;;  %s378_s2 = inlined_call_operand.vmem [shape: f32[1,16], index: 2, kind: input, shape index: {}]   ;;  %s379_s6 = inlined_call_operand.<no memory space> [shape: f32[1,1], index: 6, kind: input, shape index: {}]   ;;  %s380_s4 = inlined_call_operand.vmem [shape: f32[1,16], index: 4, kind: input, shape index: {}]   ;;  %s381_s5 = inlined_call_operand.vmem [shape: f32[1,16], index: 5, kind: input, shape index: {}]   ;;  %s382_s7 = inlined_call_operand.vmem [shape: f32[1,16], index: 7, kind: output, shape index: {}]  }
   0x1   :  { %269 = vmatprep.subr.bf16.mxu0 %v295_v0  ;;  %v288_v1 = vld [vmem:[%s375_s1 + $0x8] sm:$0xff]   ;;  %273 = vmatprep.mubr.msk.bf16.mxu0 %vm296_vm1, %v295_v0  ;;  %34 = vst.msk [vmem:[#allocation2] sm:$0xff] %vm33_vm0, %v295_v0  ;;  %35 = vst.msk [vmem:[#allocation2 + $0x8] sm:$0xff] %vm33_vm0, %v295_v0  ;;  %v289_v2 = vld [vmem:[%s375_s1] sm:$0xff]   ;;  %v297_v23 = vmov 0   ;;  %v12_v24 = vstv %s379_s6  ;;  %v238_v42 = vlaneseq  ;;  %vm249_vm3 = vcmask 122880  }
   0x2   :  { %277 = vmatprep.subr.bf16.mxu1 %v295_v0  ;;  %279 = vmatprep.mubr.msk.bf16.mxu1 %vm296_vm1, %v295_v0  ;;  %v36_v3 = vld [vmem:[%s376_s0] sm:$0xff]  ;;  %v37_v4 = vld [vmem:[%s376_s0 + $0x8] sm:$0xff]  ;;  %13 = vst [vmem:[#allocation3] sm:$0x1] %v12_v24 }
   0x3   :  { %270 = vmatpush3.bf16.msra.mxu0 %v288_v1  ;;  %v38_v5 = vpack.c.bf16 %v37_v4, %v36_v3  ;;  %v290_v6 = vld [vmem:[%s377_s3] sm:$0xff]   ;;  %286 = vset.pattern.permute.xlu1 %v297_v23  ;;  %v239_v43 = vshrl.u32 %v238_v42, 7 }
   0x4   :  { %271 = vmatprep.subr.bf16.mxu0 %v295_v0  ;;  %278 = vmatpush3.bf16.msra.mxu1 %v290_v6  ;;  %v258_v16 = vld [vmem:[%s378_s2] ss:$0 sm:$0xff] }
   0x5   :  { %287 = vset.pattern.permute.xlu0 %v297_v23  ;;  %v259_v26 = vld [vmem:[%s380_s4] ss:$0 sm:$0xff]  ;;  %v240_v44 = vsub.s32 0, %v239_v43 }
   0x6   :  { %v262_v30 = vld [vmem:[%s381_s5] ss:$0 sm:$0xff] }
   0x7   :  { %272 = vmatpush3.bf16.msra.mxu0 %v289_v2 }
   0x8   :  { %v39_v7 = vld [vmem:[#allocation2] sm:$0xff]  ;;  %v40_v11 = vld [vmem:[#allocation2 + $0x8] sm:$0xff] }
   0x9   :  { %v232_v25 = vld [vmem:[#allocation3] sm:$0x1] }
   0xa   :  { %274 = vmatmul.mubr.msk.bf16.vlgmr.msra.gmra.mxu0 %vm57_vm2, %v38_v5  ;;  %235 = vperm.xlu1 %286, %v232_v25  }
  0x85   :  { %v236_v45 = vpop.permute.xlu1 %235 }
  0x86   :  { %v241_v46 = vrot.slane %v236_v45, %v240_v44 }
  0xca   :  { %v95_v8 = vpop.f32.mrf.mxu0 }
  0xcb   :  { %v102_v9 = vadd.f32 %v95_v8, %v39_v7 }
  0xcc   :  { %v275_v10 = vpop.f32.mrf.mxu0 }
  0xcd   :  { %105 = vst.msk [vmem:[#allocation2] sm:$0xff] %vm33_vm0, %v102_v9 }
  0xce   :  { %v98_v12 = vpop.f32.mrf.mxu0 }
  0xcf   :  { %v103_v13 = vadd.f32 %v98_v12, %v40_v11 }
  0xd0   :  { %v276_v14 = vpop.f32.mrf.mxu0 }
  0xd1   :  { %106 = vst.msk [vmem:[#allocation2 + $0x8] sm:$0xff] %vm33_vm0, %v103_v13 }
  0xd4   :  { %v110_v15 = vld [vmem:[#allocation2] sm:$0xff] }
  0xd5   :  { %v119_v17 = vadd.f32 %v258_v16, %v110_v15 }
  0xd7   :  { %v121_v20 = vmax.f32 %v119_v17, 0.0 }
  0xd8   :  { %v111_v18 = vld [vmem:[#allocation2 + $0x8] sm:$0xff] }
  0xd9   :  { %v120_v19 = vadd.f32 %v258_v16, %v111_v18 }
  0xdb   :  { %v122_v21 = vmax.f32 %v120_v19, 0.0 }
  0xdd   :  { %v123_v22 = vpack.c.bf16 %v122_v21, %v121_v20 }
  0xdf   :  { %280 = vmatmul.mubr.msk.bf16.vlgmr.msra.gmra.mxu1 %vm33_vm0, %v123_v22 }
 0x19f   :  { %v176_v27 = vpop.f32.mrf.mxu1 }
 0x1a0   :  { %v177_v28 = vadd.f32 %v259_v26, %v176_v27 }
 0x1a1   :  { %v281_v29 = vpop.f32.mrf.mxu1 }
 0x1a2   :  { %v183_v31 = vmax.f32 %v177_v28, 0.0 }
 0x1a3   :  { %v179_v32 = vpop.f32.mrf.mxu1 }
 0x1a4   :  { %v180_v33 = vadd.f32 %v259_v26, %v179_v32  ;;  %v192_v34 = vmul.f32 %v262_v30, %v183_v31 }
 0x1a5   :  { %v282_v35 = vpop.f32.mrf.mxu1 }
 0x1a6   :  { %v184_v36 = vmax.f32 %v180_v33, 0.0  ;;  %v194_v37 = vsel %vm33_vm0, %v192_v34, 0.0 }
 0x1a7   :  { %195 = vadd.xlane.f32.xlu0 %v194_v37 }
 0x1a8   :  { %v193_v38 = vmul.f32 %v262_v30, %v184_v36 }
 0x1aa   :  { %v197_v39 = vsel %vm33_vm0, %v193_v38, 0.0 }
 0x1ab   :  { %198 = vadd.xlane.f32.xlu0 %v197_v39 }
 0x230   :  { %v196_v40 = vpop.xlane.xlu0 %195 }
 0x231   :  { %200 = vxpose.xlu1.b32.start [1/2] (short) (narrow) %v196_v40, 8 }
 0x234   :  { %v199_v41 = vpop.xlane.xlu0 %198 }
 0x235   :  { %201 = vxpose.xlu1.b32.end [2/2] (short) (narrow) %v199_v41, 8 }
 0x2ad   :  { %v216_v47 = vpop.trf.xlu1 }
 0x2ae   :  { %v242_v48 = vadd.f32 %v241_v46, %v216_v47 }
 0x2b0   :  { %v263_v49 = vmul.f32 -1.442695, %v242_v48 }
 0x2b2   :  { %291 = vpow2.f32 %v263_v49 }
 0x2bf   :  { %v292_v50 = vpop.eup %291 }
 0x2c0   :  { %v246_v51 = vadd.f32 1.0, %v292_v50 }
 0x2c2   :  { %293 = vrcp.f32 %v246_v51 }
 0x2cf   :  { %v294_v52 = vpop.eup %293 }
 0x2d0   :  { %250 = vst.msk [vmem:[%s382_s7] sm:$0x1] %vm249_vm3, %v294_v52 }

</bundles_post_ra>
